<compile_context>
chip_gen: v6e
topology: v6e:2x2x1
jax: 0.10.0
libtpu: 0.0.40
codegen_flags: <defaults>
</compile_context>

<pallas_src>
import functools

import jax
import jax.numpy as jnp
from jax.experimental import pallas as pl
from jax.experimental.pallas import tpu as pltpu


def _round_up(x, m):
    return (x + m - 1) // m * m


def _largest_divisor_leq(n, cap):
    cap = max(1, min(n, cap))
    for d in range(cap, 0, -1):
        if n % d == 0:
            return d
    return 1


def _vmem_capacity_bytes():
    try:
        cap = getattr(pltpu.get_tpu_info(), "vmem_capacity_bytes", None)
        if cap:
            return int(cap)
    except Exception:
        pass
    return 64 << 20  # conservative default (v7x physical VMEM)


# ---------------------------------------------------------------------------
# Pass 1: x-only statistics.  grid = (N/nb, n_chunks, tiles_per_chunk)
#   Accumulates, per (batch-block, chunk):  sum_hw(x) (Cin,1)  and  x @ x^T (Cin,Cin)
#   directly into resident output blocks (init at t==0).  No weight, no Cout-wide data.
# ---------------------------------------------------------------------------
def _stats_kernel(x_ref, gram_ref, sumx_ref, *, nb, tile_hw, tiles_per_chunk, hw,
                  mask_tail):
    t = pl.program_id(2)

    @pl.when(t == 0)
    def _():
        gram_ref[...] = jnp.zeros_like(gram_ref)
        sumx_ref[...] = jnp.zeros_like(sumx_ref)

    acc_g = None
    acc_s = None
    for i in range(nb):
        xb = x_ref[i]                                        # (Cin, tile_hw)
        if mask_tail:
            # zero the out-of-range tail lanes of the (only) ragged last tile
            g = pl.program_id(1) * tiles_per_chunk + t       # global tile index
            lane = jax.lax.broadcasted_iota(jnp.int32, xb.shape, 1)
            xb = jnp.where(g * tile_hw + lane < hw, xb, jnp.float32(0.0))
        gb = jax.lax.dot_general(xb, xb, (((1,), (1,)), ((), ())),
                                 preferred_element_type=jnp.float32)   # (Cin, Cin)
        sb = jnp.sum(xb, axis=1, keepdims=True)                         # (Cin, 1)
        acc_g = gb if acc_g is None else acc_g + gb
        acc_s = sb if acc_s is None else acc_s + sb

    gram_ref[...] += acc_g
    sumx_ref[...] += acc_s


# ---------------------------------------------------------------------------
# Pass 2: recompute the 1x1 conv and apply the folded BN (scale/bias) + ReLU.
#   Fully parallel grid; output blocks are lane-dense (tile multiple of 128);
#   ragged tail writes are dropped by Pallas' out-of-bounds masking.
# ---------------------------------------------------------------------------
def _conv_bn_relu_kernel(x_ref, w_ref, scale_ref, bias_ref, o_ref, *, nb):
    w = w_ref[...]
    s = scale_ref[...]
    b = bias_ref[...]
    for i in range(nb):
        y = jnp.dot(w, x_ref[i], preferred_element_type=jnp.float32)    # (Cout, tile)
        o_ref[i] = jnp.maximum(y * s + b, jnp.float32(0.0)).astype(o_ref.dtype)


# ---------------------------------------------------------------------------
# Wrapper
# ---------------------------------------------------------------------------
def pointwise_conv(x_nchw, weight, gamma, beta, *, eps=1e-5):
    """x_nchw: (N, Cin, H, W) f32;  weight: (Cout, Cin) f32 (1x1 conv, bias=False)
       gamma, beta: (Cout,) f32 (BatchNorm2d affine);  returns (N, Cout, H, W) f32."""
    n, cin, h, w = x_nchw.shape
    cout = weight.shape[0]
    hw = h * w
    dsize = 4  # f32 bytes

    x3 = x_nchw.reshape(n, cin, hw)          # free contiguous reshape (NCHW-native)
    w2d = weight.astype(jnp.float32)

    vmem_cap = _vmem_capacity_bytes()
    budget = int(vmem_cap * 0.6)             # tile-sizing budget (leaves pipeline headroom)
    hw_full = _round_up(hw, 128)

    # ------------------------------ pass 1 tiling ------------------------------
    t1 = min(hw_full, 16384,
             max(128, (budget // (4 * cin * dsize)) // 128 * 128))
    n_hw_tiles = pl.cdiv(hw, t1)
    nb1_want = max(1, (1 << 20) // (cin * t1 * dsize))       # >= ~1 MiB per x DMA
    nb1_fit = max(1, budget // (4 * cin * t1 * dsize))
    nb1 = _largest_divisor_leq(n, min(nb1_want, nb1_fit))
    n_chunks = 2 if (n_hw_tiles % 2 == 0 and n_hw_tiles >= 2) else 1
    tiles_per_chunk = n_hw_tiles // n_chunks
    mask_tail = (hw % t1) != 0

    fp1 = 2 * nb1 * cin * t1 * dsize + 8 * (cin * cin + cin) * dsize + (1 << 20)
    vmem_limit1 = int(min(max(fp1, 16 << 20), int(vmem_cap * 0.85)))

    part_gram, part_sum = pl.pallas_call(
        functools.partial(_stats_kernel, nb=nb1, tile_hw=t1,
                          tiles_per_chunk=tiles_per_chunk, hw=hw, mask_tail=mask_tail),
        out_shape=(
            jax.ShapeDtypeStruct((n // nb1, n_chunks, cin, cin), jnp.float32),
            jax.ShapeDtypeStruct((n // nb1, n_chunks, cin, 1), jnp.float32),
        ),
        grid_spec=pltpu.PrefetchScalarGridSpec(
            num_scalar_prefetch=0,
            grid=(n // nb1, n_chunks, tiles_per_chunk),
            in_specs=[
                pl.BlockSpec((nb1, cin, t1),
                             lambda b, c, t: (b, 0, c * tiles_per_chunk + t)),
            ],
            out_specs=[
                pl.BlockSpec((None, None, cin, cin), lambda b, c, t: (b, c, 0, 0)),
                pl.BlockSpec((None, None, cin, 1), lambda b, c, t: (b, c, 0, 0)),
            ],
        ),
        compiler_params=pltpu.CompilerParams(
            dimension_semantics=("parallel", "parallel", "arbitrary"),
            vmem_limit_bytes=vmem_limit1),
    )(x3)

    # -------- combine partials and fold BN into per-channel scale / bias (tiny) --------
    gram = jnp.sum(part_gram, axis=(0, 1))                   # (Cin, Cin)
    sum_x = jnp.sum(part_sum, axis=(0, 1))                   # (Cin, 1)
    count = jnp.float32(n * hw)                              # real (unmasked) element count
    sum_y = w2d @ sum_x                                      # (Cout, 1)
    sumsq_y = jnp.sum((w2d @ gram) * w2d, axis=1, keepdims=True)  # diag(W G W^T), (Cout, 1)
    mean = sum_y / count
    var = jnp.maximum(sumsq_y / count - mean * mean, 0.0)    # biased var, clamped >= 0
    inv_std = jax.lax.rsqrt(var + jnp.float32(eps))
    scale = gamma.reshape(cout, 1).astype(jnp.float32) * inv_std
    bias = beta.reshape(cout, 1).astype(jnp.float32) - mean * scale

    # ------------------------------ pass 2 tiling ------------------------------
    t2 = min(hw_full, 32768,
             max(128, (budget // (3 * (cin + cout) * dsize)) // 128 * 128))
    nb2_want = max(1, (1 << 20) // ((cin + cout) * t2 * dsize))
    nb2_fit = max(1, budget // (3 * (cin + cout) * t2 * dsize))
    nb2 = _largest_divisor_leq(n, min(nb2_want, nb2_fit))
    grid2 = (n // nb2, pl.cdiv(hw, t2))

    fp2 = 2 * nb2 * (cin + cout) * t2 * dsize + 2 * (cout * cin + 2 * cout) * dsize + (1 << 20)
    vmem_limit2 = int(min(max(fp2, 16 << 20), int(vmem_cap * 0.85)))

    out3 = pl.pallas_call(
        functools.partial(_conv_bn_relu_kernel, nb=nb2),
        out_shape=jax.ShapeDtypeStruct((n, cout, hw), x_nchw.dtype),
        grid_spec=pltpu.PrefetchScalarGridSpec(
            num_scalar_prefetch=0,
            grid=grid2,
            in_specs=[
                pl.BlockSpec((nb2, cin, t2), lambda b, j: (b, 0, j)),
                pl.BlockSpec((cout, cin), lambda b, j: (0, 0)),
                pl.BlockSpec((cout, 1), lambda b, j: (0, 0)),
                pl.BlockSpec((cout, 1), lambda b, j: (0, 0)),
            ],
            out_specs=pl.BlockSpec((nb2, cout, t2), lambda b, j: (b, 0, j)),
        ),
        compiler_params=pltpu.CompilerParams(
            dimension_semantics=("parallel", "parallel"),
            vmem_limit_bytes=vmem_limit2),
    )(x3, w2d, scale, bias)

    # TODO(synk): PyTorch BatchNorm2d also updates running_mean/running_var buffers in
    # training mode (a module side effect, not part of the forward output); not reproduced.
    return out3.reshape(n, cout, h, w)


def reference(x_nchw, weight, gamma, beta, eps=1e-5):
    """Pure-JAX reference reproducing the PyTorch training-mode forward."""
    cout = weight.shape[0]
    y = jnp.einsum('oi,nihw->nohw', weight, x_nchw)
    mean = jnp.mean(y, axis=(0, 2, 3), keepdims=True)
    var = jnp.mean((y - mean) ** 2, axis=(0, 2, 3), keepdims=True)  # biased
    z = (y - mean) / jnp.sqrt(var + eps)
    z = z * gamma.reshape(1, cout, 1, 1) + beta.reshape(1, cout, 1, 1)
    return jnp.maximum(z, 0.0)


if __name__ == "__main__":
    key = jax.random.PRNGKey(0)
    k_x, k_w = jax.random.split(key)

    N, C_IN, C_OUT, H, W = 2, 4, 8, 16, 16

    x = jax.random.normal(k_x, (N, C_IN, H, W), dtype=jnp.float32)
    # Conv2d(kernel_size=1, bias=False) weight is (Cout, Cin, 1, 1); squeezed to (Cout, Cin).
    weight = jax.random.normal(k_w, (C_OUT, C_IN), dtype=jnp.float32) * 0.1
    # BatchNorm2d default init: gamma=1, beta=0.
    gamma = jnp.ones((C_OUT,), dtype=jnp.float32)
    beta = jnp.zeros((C_OUT,), dtype=jnp.float32)

    out = pointwise_conv(x, weight, gamma, beta)
    out = jax.block_until_ready(out)

    ref = reference(x, weight, gamma, beta)
    assert out.shape == (N, C_OUT, H, W)
    assert jnp.allclose(out, ref, atol=1e-4, rtol=1e-4), "mismatch vs reference"

    print("KERNEL_OK")
</pallas_src>

<mosaic_0001>
module attributes {stable_mosaic.version = 11 : i64} {
  func.func @_stats_kernel(%arg0: i32, %arg1: i32, %arg2: i32, %arg3: memref<2x4x256xf32, #tpu.memory_space<vmem>>, %arg4: memref<1x1x4x4xf32, #tpu.memory_space<vmem>>, %arg5: memref<1x1x4x1xf32, #tpu.memory_space<vmem>>) attributes {dimension_semantics = [#tpu.dimension_semantics<parallel>, #tpu.dimension_semantics<parallel>, #tpu.dimension_semantics<arbitrary>], iteration_bounds = array<i64: 1, 1, 1>, scalar_prefetch = 0 : i64, scratch_operands = 0 : i64, tpu.core_type = #tpu.core_type<tc>, window_params = [{transform_indices = @transform_0, window_bounds = array<i64: 2, 4, 256>}, {transform_indices = @transform_1, window_bounds = array<i64: 1, 1, 4, 4>}, {transform_indices = @transform_2, window_bounds = array<i64: 1, 1, 4, 1>}]} {
    %c0_i32 = arith.constant 0 : i32
    %0 = arith.cmpi eq, %arg2, %c0_i32 : i32
    %1 = arith.extui %0 : i1 to i32
    %c0_i32_0 = arith.constant 0 : i32
    %2 = arith.cmpi ne, %1, %c0_i32_0 : i32
    scf.if %2 {
      %cst_24 = arith.constant 0.000000e+00 : f32
      %27 = vector.broadcast %cst_24 : f32 to vector<4x4xf32>
      %c0_25 = arith.constant 0 : index
      %c0_26 = arith.constant 0 : index
      %c0_27 = arith.constant 0 : index
      %c0_28 = arith.constant 0 : index
      %28 = vector.load %arg4[%c0_25, %c0_26, %c0_27, %c0_28] : memref<1x1x4x4xf32, #tpu.memory_space<vmem>>, vector<1x1x4x4xf32>
      %29 = vector.shape_cast %28 : vector<1x1x4x4xf32> to vector<4x4xf32>
      %30 = vector.shape_cast %27 : vector<4x4xf32> to vector<1x1x4x4xf32>
      tpu.vector_store %arg4[%c0_25, %c0_26, %c0_27, %c0_28], %30 {strides = array<i32>} : memref<1x1x4x4xf32, #tpu.memory_space<vmem>>, vector<1x1x4x4xf32>,
      %cst_29 = arith.constant 0.000000e+00 : f32
      %31 = vector.broadcast %cst_29 : f32 to vector<4x1xf32>
      %c0_30 = arith.constant 0 : index
      %c0_31 = arith.constant 0 : index
      %c0_32 = arith.constant 0 : index
      %c0_33 = arith.constant 0 : index
      %32 = vector.load %arg5[%c0_30, %c0_31, %c0_32, %c0_33] : memref<1x1x4x1xf32, #tpu.memory_space<vmem>>, vector<1x1x4x1xf32>
      %33 = vector.shape_cast %32 : vector<1x1x4x1xf32> to vector<4x1xf32>
      %34 = vector.shape_cast %31 : vector<4x1xf32> to vector<1x1x4x1xf32>
      tpu.vector_store %arg5[%c0_30, %c0_31, %c0_32, %c0_33], %34 {strides = array<i32>} : memref<1x1x4x1xf32, #tpu.memory_space<vmem>>, vector<1x1x4x1xf32>,
    } else {
    }
    %c0 = arith.constant 0 : index
    %c0_1 = arith.constant 0 : index
    %c0_2 = arith.constant 0 : index
    %3 = vector.load %arg3[%c0, %c0_1, %c0_2] : memref<2x4x256xf32, #tpu.memory_space<vmem>>, vector<1x4x256xf32>
    %4 = vector.shape_cast %3 : vector<1x4x256xf32> to vector<4x256xf32>
    %cst = arith.constant dense<0.000000e+00> : vector<4x4xf32>
    %5 = tpu.matmul %4, %4, %cst {dimension_numbers = #tpu.dot_dimension_numbers<[1], [1], [0], [0], [0, 0, 1, 0], [], []>} : vector<4x256xf32>, vector<4x256xf32>, vector<4x4xf32> -> vector<4x4xf32>
    %cst_3 = arith.constant dense<0.000000e+00> : vector<4xf32>
    %6 = vector.multi_reduction <add>, %4, %cst_3 [1] : vector<4x256xf32> to vector<4xf32>
    %7 = vector.shape_cast %6 : vector<4xf32> to vector<4x1xf32>
    %c1 = arith.constant 1 : index
    %c0_4 = arith.constant 0 : index
    %c0_5 = arith.constant 0 : index
    %8 = vector.load %arg3[%c1, %c0_4, %c0_5] : memref<2x4x256xf32, #tpu.memory_space<vmem>>, vector<1x4x256xf32>
    %9 = vector.shape_cast %8 : vector<1x4x256xf32> to vector<4x256xf32>
    %cst_6 = arith.constant dense<0.000000e+00> : vector<4x4xf32>
    %10 = tpu.matmul %9, %9, %cst_6 {dimension_numbers = #tpu.dot_dimension_numbers<[1], [1], [0], [0], [0, 0, 1, 0], [], []>} : vector<4x256xf32>, vector<4x256xf32>, vector<4x4xf32> -> vector<4x4xf32>
    %cst_7 = arith.constant dense<0.000000e+00> : vector<4xf32>
    %11 = vector.multi_reduction <add>, %9, %cst_7 [1] : vector<4x256xf32> to vector<4xf32>
    %12 = vector.shape_cast %11 : vector<4xf32> to vector<4x1xf32>
    %13 = arith.addf %5, %10 : vector<4x4xf32>
    %14 = arith.addf %7, %12 : vector<4x1xf32>
    %c0_8 = arith.constant 0 : index
    %c0_9 = arith.constant 0 : index
    %c0_10 = arith.constant 0 : index
    %c0_11 = arith.constant 0 : index
    %15 = vector.load %arg4[%c0_8, %c0_9, %c0_10, %c0_11] : memref<1x1x4x4xf32, #tpu.memory_space<vmem>>, vector<1x1x4x4xf32>
    %16 = vector.shape_cast %15 : vector<1x1x4x4xf32> to vector<4x4xf32>
    %17 = arith.addf %16, %13 : vector<4x4xf32>
    %c0_12 = arith.constant 0 : index
    %c0_13 = arith.constant 0 : index
    %c0_14 = arith.constant 0 : index
    %c0_15 = arith.constant 0 : index
    %18 = vector.load %arg4[%c0_12, %c0_13, %c0_14, %c0_15] : memref<1x1x4x4xf32, #tpu.memory_space<vmem>>, vector<1x1x4x4xf32>
    %19 = vector.shape_cast %18 : vector<1x1x4x4xf32> to vector<4x4xf32>
    %20 = vector.shape_cast %17 : vector<4x4xf32> to vector<1x1x4x4xf32>
    tpu.vector_store %arg4[%c0_12, %c0_13, %c0_14, %c0_15], %20 {strides = array<i32>} : memref<1x1x4x4xf32, #tpu.memory_space<vmem>>, vector<1x1x4x4xf32>,
    %c0_16 = arith.constant 0 : index
    %c0_17 = arith.constant 0 : index
    %c0_18 = arith.constant 0 : index
    %c0_19 = arith.constant 0 : index
    %21 = vector.load %arg5[%c0_16, %c0_17, %c0_18, %c0_19] : memref<1x1x4x1xf32, #tpu.memory_space<vmem>>, vector<1x1x4x1xf32>
    %22 = vector.shape_cast %21 : vector<1x1x4x1xf32> to vector<4x1xf32>
    %23 = arith.addf %22, %14 : vector<4x1xf32>
    %c0_20 = arith.constant 0 : index
    %c0_21 = arith.constant 0 : index
    %c0_22 = arith.constant 0 : index
    %c0_23 = arith.constant 0 : index
    %24 = vector.load %arg5[%c0_20, %c0_21, %c0_22, %c0_23] : memref<1x1x4x1xf32, #tpu.memory_space<vmem>>, vector<1x1x4x1xf32>
    %25 = vector.shape_cast %24 : vector<1x1x4x1xf32> to vector<4x1xf32>
    %26 = vector.shape_cast %23 : vector<4x1xf32> to vector<1x1x4x1xf32>
    tpu.vector_store %arg5[%c0_20, %c0_21, %c0_22, %c0_23], %26 {strides = array<i32>} : memref<1x1x4x1xf32, #tpu.memory_space<vmem>>, vector<1x1x4x1xf32>,
    return
  }
  func.func @transform_0(%arg0: i32, %arg1: i32, %arg2: i32) -> (i32, i32, i32) {
    %c1_i32 = arith.constant 1 : i32
    %0 = arith.muli %arg1, %c1_i32 : i32
    %1 = arith.addi %0, %arg2 : i32
    %c0_i32 = arith.constant 0 : i32
    %c0_i32_0 = arith.constant 0 : i32
    return %arg0, %c0_i32, %1 : i32, i32, i32
  }
  func.func @transform_1(%arg0: i32, %arg1: i32, %arg2: i32) -> (i32, i32, i32, i32) {
    %c0_i32 = arith.constant 0 : i32
    %c0_i32_0 = arith.constant 0 : i32
    %c0_i32_1 = arith.constant 0 : i32
    return %arg0, %arg1, %c0_i32, %c0_i32_0 : i32, i32, i32, i32
  }
  func.func @transform_2(%arg0: i32, %arg1: i32, %arg2: i32) -> (i32, i32, i32, i32) {
    %c0_i32 = arith.constant 0 : i32
    %c0_i32_0 = arith.constant 0 : i32
    %c0_i32_1 = arith.constant 0 : i32
    return %arg0, %arg1, %c0_i32, %c0_i32_0 : i32, i32, i32, i32
  }
}

</mosaic_0001>

<bundles_post_ra>
// kernel: tpu_custom_call.1
= control target key start
LH: loop header
LB: loop body
LE: loop exit
PB: predicated region body
PF: predicated region fallthrough
CT: control target
= control target key end

     0   :  { %8 = vsyncpa [#allocation3], 0  ;;  %s315_s0 = inlined_call_operand.hbm [shape: f32[2,4,256], index: 0, kind: input, shape index: {}]   ;;  %s316_s1 = inlined_call_operand.hbm [shape: f32[1,1,4,4], index: 1, kind: output, shape index: {0}]   ;;  %s317_s2 = inlined_call_operand.vmem [shape: f32[1,1,4,1], index: 2, kind: output, shape index: {1}]  }
   0x1   :  { %9 = vsyncpa [#allocation4], 0  ;;  %s278_s9 = smov [#allocation2]  }
   0x2   :  { %s19_s10 = sshll.u32 %s278_s9, 4  ;;  %s20_s10 = int_to_ptr.vmem [resolvable:$true] %s19_s10 }
   0x3   :  { %s242_s11 = scalar_lea.vmem %s20_s10, 256  ;;  %p247_p1 = scmp.lt.s32.totalorder %s20_s10, %s20_s10 }
   0x4   :  { %p243_p0 = scmp.ne.s32.totalorder %s20_s10, %s242_s11  ;;  %p248_p2 = scmp.lt.s32.totalorder %s242_s11, %s242_s11 }
   0x6   :  { %p249_p3 = por %p248_p2, %p247_p1 }
   0x8   :  { %p250_p4 = pnand %p249_p3, %p243_p0 }
   0xa   :  { %253 = shalt.err (!%p250_p4)
}
   0xb   :  { %s279_s12 = smov 128   ;;  %s280_s13 = smov 8  }
   0xc   :  { %25 = dma.hbm_to_vmem [thread:$0]  %s315_s0, 256, %s20_s10, [#allocation3], %s279_s12, %s279_s12, %s280_s13  }
   0xd   :  { %274 = dma.done.wait [#allocation3], 256  }
   0xe   :  { %275 = vsyncadd [#allocation3], 4294967040  ;;  %vm35_vm0 = vcmask 27648   ;;  %v281_v0 = vmov 0.0   ;;  %vm43_vm1 = vcmask 1043456   ;;  %v50_v1 = vld [vmem:[#allocation2 + $0x8] sm:$0xff] }
   0xf   :  { %36 = vst.msk [vmem:[#allocation5] sm:$0xf] %vm35_vm0, %v281_v0  ;;  %v39_v2 = vld [vmem:[#allocation2] sm:$0xff]  ;;  %v52_v3 = vcombine.high %v50_v1, %v50_v1  ;;  %v124_v7 = vsel %vm43_vm1, %v50_v1, 0.0  ;;  %vm37_vm2 = vcmask 3072   ;;  %s282_s21 = smov [#allocation5]  }
  0x10   :  { %v41_v4 = vcombine.high %v39_v2, %v39_v2  ;;  %v44_v5 = vsel %vm43_vm1, %v39_v2, 0.0  ;;  %38 = vst.msk [vmem:[%s317_s2] sm:$0xf] %vm37_vm2, %v281_v0  ;;  %s214_s22 = sshll.u32 %s282_s21, 4  ;;  %s215_s22 = int_to_ptr.vmem [resolvable:$true] %s214_s22 }
  0x11   :  { %84 = vmatprep.subr.mxu0 %v52_v3  ;;  %v125_v8 = vsel %vm43_vm1, %v52_v3, 0.0  ;;  %118 = vmatprep.mubr.f32.mxu0 %v52_v3  ;;  %s254_s23 = scalar_lea.vmem %s215_s22, 64  ;;  %p259_p6 = scmp.lt.s32.totalorder %s215_s22, %s215_s22 }
  0x12   :  { %159 = vmatprep.subr.mxu1 %v41_v4  ;;  %v45_v6 = vsel %vm43_vm1, %v41_v4, 0.0  ;;  %85 = vmatpush1.xpose.msra.mxu0 %v50_v1  ;;  %v126_v10 = vadd.f32 %v125_v8, %v124_v7  ;;  %p255_p5 = scmp.ne.s32.totalorder %s215_s22, %s254_s23  ;;  %p260_p7 = scmp.lt.s32.totalorder %s254_s23, %s254_s23 }
  0x13   :  { %160 = vmatpush1.xpose.msra.mxu1 %v39_v2  ;;  %v46_v9 = vadd.f32 %v45_v6, %v44_v5  ;;  %193 = vmatprep.mubr.f32.mxu1 %v41_v4 }
  0x14   :  { %p261_p8 = por %p260_p7, %p259_p6 }
  0x15   :  { %47 = vadd.xlane.f32.xlu0 %v46_v9  ;;  %119 = vmatmul.mubr.f32.vlgmr.msra.gmra.mxu0 %v50_v1 }
  0x16   :  { %194 = vmatmul.mubr.f32.vlgmr.msra.gmra.mxu1 %v39_v2  ;;  %v200_v18 = vld [vmem:[#allocation5] sm:$0xf]  ;;  %p262_p9 = pnand %p261_p8, %p255_p5 }
  0x17   :  { %v204_v13 = vld [vmem:[%s317_s2] sm:$0xf] }
  0x19   :  { %127 = vadd.xlane.f32.xlu0 %v126_v10 }
  0x9e   :  { %v48_v11 = vpop.xlane.xlu0 %47 }
  0xa2   :  { %v128_v12 = vpop.xlane.xlu0 %127 }
  0xa3   :  { %v199_v14 = vadd.f32 %v128_v12, %v48_v11 }
  0xa5   :  { %v205_v15 = vadd.f32 %v204_v13, %v199_v14 }
  0xa7   :  { %207 = vst.msk [vmem:[%s317_s2] sm:$0xf] %vm37_vm2, %v205_v15 }
  0xd5   :  { %v120_v16 = vpop.f32.mrf.mxu0 }
  0xd6   :  { %v195_v17 = vpop.f32.mrf.mxu1 }
  0xd7   :  { %v196_v19 = vadd.f32 %v195_v17, %v120_v16  ;;  %v122_v20 = vpop.f32.mrf.mxu0 }
  0xd8   :  { %v197_v21 = vpop.f32.mrf.mxu1 }
  0xd9   :  { %v201_v22 = vadd.f32 %v200_v18, %v196_v19 }
  0xdb   :  { %203 = vst.msk [vmem:[#allocation5] sm:$0xf] %vm35_vm0, %v201_v22 }
  0xdc   :  { %265 = shalt.err (!%p262_p9)
}
  0xdd   :  { %217 = dma.vmem_to_hbm [thread:$0]  %s215_s22, 64, %s316_s1, [#allocation4]  }
  0xde   :  { %276 = dma.done.wait [#allocation4], 64  }
  0xdf   :  { %277 = vsyncadd [#allocation4], 4294967232 }
  0xe0   :  { %225 = vsyncpa [#allocation3], 1 }
  0xe1   :  { %226 = vsyncpa [#allocation4], 1 }

</bundles_post_ra>
